<compile_context>
chip_gen: v6e
topology: v6e:2x2x1
jax: 0.10.0
libtpu: 0.0.40
codegen_flags: <defaults>
</compile_context>

<pallas_src>
import jax
import jax.numpy as jnp
from jax.experimental import pallas as pl
from jax.experimental.pallas import tpu as pltpu

# BlendParams default background color (PyTorch3D default is (1.0, 1.0, 1.0))
BACKGROUND_COLOR = (1.0, 1.0, 1.0)

# Max lane-dense tile along the flattened-pixel axis.  With packed (9,T) /
# (4,T) / (4,T) blocks the double-buffered VMEM footprint at 32768 is ~8 MiB,
# inside the default scoped VMEM on v5e/v6e/v7x.
DEFAULT_PIX_TILE = 32768


def _round_up(x: int, m: int) -> int:
    return ((x + m - 1) // m) * m


def _cdiv(a: int, b: int) -> int:
    return -(-a // b)


def nolight_shader_kernel(colors_ref, slab_ref, out_ref):
    # colors_ref: (9, T) f32  gathered face-vertex colors, row = vertex*3 + ch
    # slab_ref:   (4, T) f32  rows 0..2 = barycentrics, row 3 = pix_to_face
    # out_ref:    (4, T) f32  RGBA output
    b0 = slab_ref[0:1, :]
    b1 = slab_ref[1:2, :]
    b2 = slab_ref[2:3, :]
    pf = slab_ref[3:4, :]
    is_bg = pf < 0.0                                   # (1, T) background mask

    rows = []
    for c in range(3):
        # interpolate_face_attributes: sum_v bary[v] * vert_color[v, c]
        texel_c = (b0 * colors_ref[c:c + 1, :]
                   + b1 * colors_ref[3 + c:4 + c, :]
                   + b2 * colors_ref[6 + c:7 + c, :])
        # hard_rgb_blend: background pixels take background_color.
        rows.append(jnp.where(is_bg, jnp.float32(BACKGROUND_COLOR[c]), texel_c))
    # Alpha: 1.0 where covered, 0.0 on background.
    alpha = jnp.where(is_bg, jnp.float32(0.0), jnp.float32(1.0))

    # Single combined (4, T) RGBA store (one store per lane-vreg column).
    out_ref[...] = jnp.concatenate(rows + [alpha], axis=0)


def nolight_shader(pix_to_face, bary_coords, faces, verts_colors):
    """
    pix_to_face:  (N, H, W, K) int32, -1 for uncovered pixels
    bary_coords:  (N, H, W, K, 3) float32
    faces:        (F, 3) int32 vertex indices
    verts_colors: (V, 3) float32 per-vertex RGB (TexturesVertex features)
    returns:      (N, H, W, 4) float32 RGBA image
    """
    N, H, W, K = pix_to_face.shape
    P = N * H * W

    # Balanced tiles: bound padding waste, and keep >=2 grid steps when there
    # is enough work so the 'parallel' axis can shard across v7x's 2 TCs.
    n_tiles = max(_cdiv(P, DEFAULT_PIX_TILE), 2 if P >= 256 else 1)
    tile = _round_up(_cdiv(P, n_tiles), 128)
    P_pad = tile * n_tiles
    pad = P_pad - P

    # ---- glue: channel-major data-dependent gather (outside the kernel) ----
    # Transpose the SMALL (F, 3, 3) table once -> (9, F) with row = v*3 + c;
    # the big gather lands directly in the packed (9, P) layout.
    table9 = jnp.transpose(
        verts_colors[faces].astype(jnp.float32), (1, 2, 0)).reshape(9, -1)

    pf0 = pix_to_face[..., 0].reshape(P).astype(jnp.int32)       # K=0 face
    bary0 = bary_coords[..., 0, :].reshape(P, 3).astype(jnp.float32)
    if pad:
        pf0 = jnp.pad(pf0, (0, pad), constant_values=-1)
        bary0 = jnp.pad(bary0, ((0, pad), (0, 0)))

    pf_safe = jnp.where(pf0 >= 0, pf0, 0)
    colors9 = table9[:, pf_safe]                                  # (9, P_pad)

    # Packed bary + face-id slab (row 3 cast is exact for ids < 2**24; the
    # kernel only needs its sign).  Background colors are applied in-kernel,
    # so no host-side zeroing / bg-mask materialization is needed.
    slab = jnp.concatenate(
        [bary0.T, pf0.astype(jnp.float32)[None, :]], axis=0)     # (4, P_pad)

    out_cm = pl.pallas_call(
        nolight_shader_kernel,
        out_shape=jax.ShapeDtypeStruct((4, P_pad), jnp.float32),
        grid_spec=pltpu.PrefetchScalarGridSpec(
            num_scalar_prefetch=0,
            grid=(n_tiles,),
            in_specs=[
                pl.BlockSpec((9, tile), lambda i: (0, i)),
                pl.BlockSpec((4, tile), lambda i: (0, i)),
            ],
            out_specs=pl.BlockSpec((4, tile), lambda i: (0, i)),
        ),
        compiler_params=pltpu.CompilerParams(
            dimension_semantics=("parallel",)),
    )(colors9, slab)

    # (4, P_pad) -> drop padding -> (N, H, W, 4).  Kernel output stays
    # lane-dense; this wrapper transpose only exists because the module's
    # contract is NHWC4.
    return out_cm[:, :P].T.reshape(N, H, W, 4)


def _reference(pix_to_face, bary_coords, faces, verts_colors):
    """Pure-JAX reference replicating sample_textures + hard_rgb_blend."""
    faces_verts_colors = verts_colors[faces]                      # (F, 3, 3)
    pf = pix_to_face                                              # (N,H,W,K)
    valid = pf >= 0
    pf_safe = jnp.where(valid, pf, 0)
    vcols = faces_verts_colors[pf_safe]                           # (N,H,W,K,3,3)
    vcols = jnp.where(valid[..., None, None], vcols, 0.0)
    texels = jnp.sum(bary_coords[..., None] * vcols, axis=-2)     # (N,H,W,K,3)
    is_bg = pf[..., 0] < 0                                        # (N,H,W)
    bg = jnp.array(BACKGROUND_COLOR, dtype=jnp.float32)
    rgb = jnp.where(is_bg[..., None], bg, texels[..., 0, :])      # (N,H,W,3)
    alpha = (~is_bg).astype(jnp.float32)[..., None]               # (N,H,W,1)
    return jnp.concatenate([rgb, alpha], axis=-1)                 # (N,H,W,4)


if __name__ == "__main__":
    key = jax.random.PRNGKey(0)
    k1, k2, k3, k4 = jax.random.split(key, 4)

    # Small synthetic rasterizer outputs + mesh/texture
    N, H, W, K = 2, 16, 16, 1        # K faces-per-pixel (blend uses K=0 only)
    V, F = 32, 48                    # vertices, faces

    # TexturesVertex features: per-vertex RGB in [0, 1]
    verts_colors = jax.random.uniform(k1, (V, 3), dtype=jnp.float32)
    faces = jax.random.randint(k2, (F, 3), 0, V, dtype=jnp.int32)

    # fragments.pix_to_face: -1 (background) or a face index
    pix_to_face = jax.random.randint(k3, (N, H, W, K), -1, F, dtype=jnp.int32)

    # fragments.bary_coords: normalized to sum to 1
    raw = jax.random.uniform(k4, (N, H, W, K, 3), dtype=jnp.float32) + 1e-3
    bary_coords = raw / jnp.sum(raw, axis=-1, keepdims=True)

    images = nolight_shader(pix_to_face, bary_coords, faces, verts_colors)
    images = jax.block_until_ready(images)

    ref = _reference(pix_to_face, bary_coords, faces, verts_colors)
    assert images.shape == (N, H, W, 4)
    assert jnp.allclose(images, ref, atol=1e-5, rtol=1e-5)

    print("KERNEL_OK")
</pallas_src>

<mosaic_0001>
module attributes {stable_mosaic.version = 11 : i64} {
  func.func @nolight_shader_kernel(%arg0: i32, %arg1: memref<9x256xf32, #tpu.memory_space<vmem>>, %arg2: memref<4x256xf32, #tpu.memory_space<vmem>>, %arg3: memref<4x256xf32, #tpu.memory_space<vmem>>) attributes {dimension_semantics = [#tpu.dimension_semantics<parallel>], iteration_bounds = array<i64: 2>, scalar_prefetch = 0 : i64, scratch_operands = 0 : i64, tpu.core_type = #tpu.core_type<tc>, window_params = [{transform_indices = @transform_0, window_bounds = array<i64: 9, 256>}, {transform_indices = @transform_1, window_bounds = array<i64: 4, 256>}, {transform_indices = @transform_2, window_bounds = array<i64: 4, 256>}]} {
    %c0 = arith.constant 0 : index
    %c0_0 = arith.constant 0 : index
    %0 = vector.load %arg2[%c0, %c0_0] : memref<4x256xf32, #tpu.memory_space<vmem>>, vector<1x256xf32>
    %c1 = arith.constant 1 : index
    %c0_1 = arith.constant 0 : index
    %1 = vector.load %arg2[%c1, %c0_1] : memref<4x256xf32, #tpu.memory_space<vmem>>, vector<1x256xf32>
    %c2 = arith.constant 2 : index
    %c0_2 = arith.constant 0 : index
    %2 = vector.load %arg2[%c2, %c0_2] : memref<4x256xf32, #tpu.memory_space<vmem>>, vector<1x256xf32>
    %c3 = arith.constant 3 : index
    %c0_3 = arith.constant 0 : index
    %3 = vector.load %arg2[%c3, %c0_3] : memref<4x256xf32, #tpu.memory_space<vmem>>, vector<1x256xf32>
    %cst = arith.constant 0.000000e+00 : f32
    %4 = vector.broadcast %cst : f32 to vector<1x256xf32>
    %5 = arith.cmpf olt, %3, %4 : vector<1x256xf32>
    %c0_4 = arith.constant 0 : index
    %c0_5 = arith.constant 0 : index
    %6 = vector.load %arg1[%c0_4, %c0_5] : memref<9x256xf32, #tpu.memory_space<vmem>>, vector<1x256xf32>
    %7 = arith.mulf %0, %6 : vector<1x256xf32>
    %c3_6 = arith.constant 3 : index
    %c0_7 = arith.constant 0 : index
    %8 = vector.load %arg1[%c3_6, %c0_7] : memref<9x256xf32, #tpu.memory_space<vmem>>, vector<1x256xf32>
    %9 = arith.mulf %1, %8 : vector<1x256xf32>
    %10 = arith.addf %7, %9 : vector<1x256xf32>
    %c6 = arith.constant 6 : index
    %c0_8 = arith.constant 0 : index
    %11 = vector.load %arg1[%c6, %c0_8] : memref<9x256xf32, #tpu.memory_space<vmem>>, vector<1x256xf32>
    %12 = arith.mulf %2, %11 : vector<1x256xf32>
    %13 = arith.addf %10, %12 : vector<1x256xf32>
    %cst_9 = arith.constant 1.000000e+00 : f32
    %14 = vector.broadcast %cst_9 : f32 to vector<1x256xf32>
    %15 = arith.select %5, %14, %13 : vector<1x256xi1>, vector<1x256xf32>
    %c1_10 = arith.constant 1 : index
    %c0_11 = arith.constant 0 : index
    %16 = vector.load %arg1[%c1_10, %c0_11] : memref<9x256xf32, #tpu.memory_space<vmem>>, vector<1x256xf32>
    %17 = arith.mulf %0, %16 : vector<1x256xf32>
    %c4 = arith.constant 4 : index
    %c0_12 = arith.constant 0 : index
    %18 = vector.load %arg1[%c4, %c0_12] : memref<9x256xf32, #tpu.memory_space<vmem>>, vector<1x256xf32>
    %19 = arith.mulf %1, %18 : vector<1x256xf32>
    %20 = arith.addf %17, %19 : vector<1x256xf32>
    %c7 = arith.constant 7 : index
    %c0_13 = arith.constant 0 : index
    %21 = vector.load %arg1[%c7, %c0_13] : memref<9x256xf32, #tpu.memory_space<vmem>>, vector<1x256xf32>
    %22 = arith.mulf %2, %21 : vector<1x256xf32>
    %23 = arith.addf %20, %22 : vector<1x256xf32>
    %cst_14 = arith.constant 1.000000e+00 : f32
    %24 = vector.broadcast %cst_14 : f32 to vector<1x256xf32>
    %25 = arith.select %5, %24, %23 : vector<1x256xi1>, vector<1x256xf32>
    %c2_15 = arith.constant 2 : index
    %c0_16 = arith.constant 0 : index
    %26 = vector.load %arg1[%c2_15, %c0_16] : memref<9x256xf32, #tpu.memory_space<vmem>>, vector<1x256xf32>
    %27 = arith.mulf %0, %26 : vector<1x256xf32>
    %c5 = arith.constant 5 : index
    %c0_17 = arith.constant 0 : index
    %28 = vector.load %arg1[%c5, %c0_17] : memref<9x256xf32, #tpu.memory_space<vmem>>, vector<1x256xf32>
    %29 = arith.mulf %1, %28 : vector<1x256xf32>
    %30 = arith.addf %27, %29 : vector<1x256xf32>
    %c8 = arith.constant 8 : index
    %c0_18 = arith.constant 0 : index
    %31 = vector.load %arg1[%c8, %c0_18] : memref<9x256xf32, #tpu.memory_space<vmem>>, vector<1x256xf32>
    %32 = arith.mulf %2, %31 : vector<1x256xf32>
    %33 = arith.addf %30, %32 : vector<1x256xf32>
    %cst_19 = arith.constant 1.000000e+00 : f32
    %34 = vector.broadcast %cst_19 : f32 to vector<1x256xf32>
    %35 = arith.select %5, %34, %33 : vector<1x256xi1>, vector<1x256xf32>
    %cst_20 = arith.constant 0.000000e+00 : f32
    %cst_21 = arith.constant 1.000000e+00 : f32
    %36 = vector.broadcast %cst_20 : f32 to vector<1x256xf32>
    %37 = vector.broadcast %cst_21 : f32 to vector<1x256xf32>
    %38 = arith.select %5, %36, %37 : vector<1x256xi1>, vector<1x256xf32>
    %39 = tpu.concatenate %15, %25, %35, %38 in 0 : vector<1x256xf32>, vector<1x256xf32>, vector<1x256xf32>, vector<1x256xf32> -> vector<4x256xf32>
    %c0_22 = arith.constant 0 : index
    %c0_23 = arith.constant 0 : index
    %40 = vector.load %arg3[%c0_22, %c0_23] : memref<4x256xf32, #tpu.memory_space<vmem>>, vector<4x256xf32>
    tpu.vector_store %arg3[%c0_22, %c0_23], %39 {strides = array<i32>} : memref<4x256xf32, #tpu.memory_space<vmem>>, vector<4x256xf32>,
    return
  }
  func.func @transform_0(%arg0: i32) -> (i32, i32) {
    %c0_i32 = arith.constant 0 : i32
    %c0_i32_0 = arith.constant 0 : i32
    return %c0_i32, %arg0 : i32, i32
  }
  func.func @transform_1(%arg0: i32) -> (i32, i32) {
    %c0_i32 = arith.constant 0 : i32
    %c0_i32_0 = arith.constant 0 : i32
    return %c0_i32, %arg0 : i32, i32
  }
  func.func @transform_2(%arg0: i32) -> (i32, i32) {
    %c0_i32 = arith.constant 0 : i32
    %c0_i32_0 = arith.constant 0 : i32
    return %c0_i32, %arg0 : i32, i32
  }
}

</mosaic_0001>

<bundles_post_ra>
// kernel: tpu_custom_call.1
= control target key start
LH: loop header
LB: loop body
LE: loop exit
PB: predicated region body
PF: predicated region fallthrough
CT: control target
= control target key end

     0   :  { %7 = vsyncpa [#allocation3], 0  ;;  %s856_s0 = inlined_call_operand.hbm [shape: f32[9,512], index: 0, kind: input, shape index: {}]   ;;  %s857_s1 = inlined_call_operand.hbm [shape: f32[4,512], index: 1, kind: input, shape index: {}]   ;;  %s858_s2 = inlined_call_operand.hbm [shape: f32[4,512], index: 2, kind: output, shape index: {}]  }
   0x1   :  { %9 = vsyncpa [#allocation3 + $0x1], 0 }
   0x2   :  { %10 = vsyncpa [#allocation6], 0 }
   0x3   :  { %12 = vsyncpa [#allocation6 + $0x1], 0 }
   0x4   :  { %13 = vsyncpa [#allocation4], 0 }
   0x5   :  { %15 = vsyncpa [#allocation4 + $0x1], 0  ;;  %s648_s9 = smov 0   ;;  %s650_s10 = smov 0  }
   0x6   :  { %s652_s11 = smov 0   ;;  %s654_s12 = smov 0  }
   0x7 LB: > { %s669_s13 = sadd.s32 4294967295, %s624_s12   ;;  %s413_s14 = sadd.s32 4294967294, %s624_s12   ;;  %s624_s12 = sphi %s654_s12, %s876_s12   ;;  %s620_s11 = sphi %s652_s11, %s875_s11   ;;  %s616_s10 = sphi %s650_s10, %s874_s10   ;;  %s612_s9 = sphi %s648_s9, %s873_s9  }
   0x8   : > { %s673_s15 = sadd.s32 1, %s624_s12   ;;  %s28_s16 = sadd.s32 1, %s620_s11 }
   0x9   : > { %s25_s17 = ssub.s32 %s624_s12, %s673_s15  ;;  %p35_p0 = scmp.ne.s32.totalorder %s620_s11, %s616_s10 }
   0xa   : > { %p26_p1 = scmp.eq.s32.totalorder %s25_s17, 0  ;;  %p36_p2 = scmp.eq.s32.totalorder %s624_s12, 0 }
   0xb   : > { %p41_p3 = scmp.ne.s32.totalorder %s616_s10, %s612_s9  ;;  %p42_p4 = scmp.eq.s32.totalorder %s669_s13, 0 }
   0xc   : > { %s685_s18 = scalar_select %p26_p1, %s620_s11, %s28_s16  }
   0xd   : > { %p687_p5 = por %p36_p2, %p35_p0  ;;  %p691_p6 = por %p42_p4, %p41_p3 }
   0xe   : > { %p91_p7 = scmp.eq.s32.totalorder %s669_s13, 1  ;;  %p97_p8 = scmp.eq.s32.totalorder %s413_s14, 1 }
   0xf   : > { %s862_s20 = scalar_select %p691_p6, 1, 0 }
  0x10   : > { %p462_p10 = scmp.lt.s32.totalorder %s624_s12, 2  ;;  %p698_p11 = por %p91_p7, %p35_p0 }
  0x11   : > { %p702_p12 = por %p97_p8, %p41_p3  ;;  %s707_s23 = sand.u32 1, %s620_s11  }
  0x12   : > { %s863_s21 = scalar_select %p698_p11, 1, 0 }
  0x13   : > { %s864_s22 = scalar_select %p702_p12, 1, 0 }
  0x14   : > { %s442_s24 = sshll.u32 %s624_s12, 8  ;;  %s416_s25 = sshll.u32 %s707_s23, 5 }
  0x15   : > { %s714_s28 = scalar_lea.hbm %s856_s0, %s442_s24  ;;  %s121_s29 = scalar_lea.vmem [#allocation2], %s416_s25 }
  0x16   : > { %s128_s30 = sshll.u32 %s121_s29, 4  ;;  %p718_p13 = pnand %p462_p10, %p687_p5  ;;  %s722_s30 = int_to_ptr.vmem [resolvable:$true] %s128_s30 }
  0x17   : > { %s118_s4 = scalar_lea.sflag [#allocation3], %s707_s23  ;;  %s500_s5 = scalar_lea.hbm %s714_s28, 512 }
  0x18   : > { %p501_p1 = scmp.ne.s32.totalorder %s714_s28, %s500_s5  ;;  %p502_p2 = pneg %p718_p13 }
  0x19   : > { %s505_s8 = scalar_lea.hbm %s856_s0, 1024  ;;  %p506_p5 = scmp.lt.s32.totalorder %s714_s28, %s856_s0 }
  0x1a   : > { %p503_p3 = pnand %p502_p2, %p501_p1  ;;  %p507_p7 = scmp.lt.s32.totalorder %s505_s8, %s500_s5 }
  0x1c   : > { %p504_p4 = pneg %p503_p3  ;;  %p508_p8 = por %p507_p7, %p506_p5 }
  0x1e   : > { %p509_p10 = pnand %p508_p8, %p504_p4 }
  0x20   : > { %512 = shalt.err (!%p509_p10)
}
  0x21   : > { %s513_s17 = scalar_lea.vmem %s722_s30, 512  ;;  %s626_s19 = smov [#allocation2]  }
  0x22   : > { %p514_p9 = scmp.ne.s32.totalorder %s722_s30, %s513_s17  ;;  %s518_s24 = sshll.u32 %s626_s19, 4  ;;  %s519_s24 = int_to_ptr.vmem [resolvable:$false] %s518_s24 }
  0x23   : > { %s520_s25 = scalar_lea.vmem %s519_s24, 1024  ;;  %p521_p0 = scmp.lt.s32.totalorder %s722_s30, %s519_s24 }
  0x24   : > { %p516_p1 = pnand %p514_p9, %p502_p2  ;;  %p522_p12 = scmp.lt.s32.totalorder %s520_s25, %s513_s17 }
  0x26   : > { %p517_p3 = pneg %p516_p1  ;;  %p523_p11 = por %p522_p12, %p521_p0 }
  0x28   : > { %p524_p5 = pnand %p523_p11, %p517_p3 }
  0x2a   : > { %527 = shalt.err (!%p524_p5)
}
  0x2b   : > { %s627_s26 = smov 512   ;;  %s628_s27 = smov 256  }
  0x2c   : > { %s629_s29 = smov 16   ;;  %p155_p9 = scmp.lt.s32.totalorder %s624_s12, 3 }
  0x2d   : > { %454 = dma.hbm_to_vmem [thread:$0]  (!%p718_p13), %s714_s28, 512, %s722_s30, %s118_s4, %s627_s26, %s628_s27, %s629_s29  }
  0x2e   : > { %s419_s5 = sshll.u32 %s707_s23, 3  ;;  %s443_s6 = sshll.u32 %s624_s12, 7 }
  0x2f   : > { %p866_p11 = scmp.ge.s32.totalorder %s624_s12, 1  ;;  %s764_s16 = scalar_lea.hbm %s857_s1, %s443_s6 }
  0x30   : > { %s142_s17 = scalar_lea.vmem [#allocation5], %s419_s5  ;;  %s139_s28 = scalar_lea.sflag [#allocation6], %s707_s23 }
  0x31   : > { %p757_p12 = pnand %p866_p11, %p155_p9  ;;  %s150_s19 = sshll.u32 %s142_s17, 4  ;;  %s151_s19 = int_to_ptr.vmem [resolvable:$true] %s150_s19 }
  0x32   : > { %s528_s30 = scalar_lea.hbm %s764_s16, 128  ;;  %s533_s25 = scalar_lea.hbm %s857_s1, 256 }
  0x33   : > { %s867_s7 = scalar_select %p757_p12, 1, 0 }
  0x34   : > { %p529_p0 = scmp.ne.s32.totalorder %s764_s16, %s528_s30  ;;  %p534_p8 = scmp.lt.s32.totalorder %s764_s16, %s857_s1 }
  0x35   : > { %p535_p10 = scmp.lt.s32.totalorder %s533_s25, %s528_s30 }
  0x36   : > { %p531_p4 = pnand %p529_p0, %p502_p2 }
  0x37   : > { %p536_p1 = por %p535_p10, %p534_p8 }
  0x38   : > { %p532_p7 = pneg %p531_p4 }
  0x3a   : > { %p537_p3 = pnand %p536_p1, %p532_p7 }
  0x3c   : > { %540 = shalt.err (!%p537_p3)
}
  0x3d   : > { %s541_s29 = scalar_lea.vmem %s151_s19, 128  ;;  %s630_s23 = smov [#allocation5]  }
  0x3e   : > { %p542_p5 = scmp.ne.s32.totalorder %s151_s19, %s541_s29  ;;  %s546_s5 = sshll.u32 %s630_s23, 4  ;;  %s547_s5 = int_to_ptr.vmem [resolvable:$false] %s546_s5 }
  0x3f   : > { %s548_s6 = scalar_lea.vmem %s547_s5, 256  ;;  %p549_p0 = scmp.lt.s32.totalorder %s151_s19, %s547_s5 }
  0x40   : > { %p544_p9 = pnand %p542_p5, %p502_p2  ;;  %p550_p4 = scmp.lt.s32.totalorder %s548_s6, %s541_s29 }
  0x42   : > { %p545_p11 = pneg %p544_p9  ;;  %p551_p6 = por %p550_p4, %p549_p0 }
  0x44   : > { %p552_p12 = pnand %p551_p6, %p545_p11 }
  0x46   : > { %555 = shalt.err (!%p552_p12)
}
  0x47   : > { %457 = dma.hbm_to_vmem [thread:$0]  (!%p718_p13), %s764_s16, 128, %s151_s19, %s139_s28  }
  0x48   : > { %p868_p7 = scmp.ne.s32.totalorder %s867_s7, 0 }
  0x49   : > { %s788_s8 = sand.u32 (!%p868_p7), 1, %s616_s10   ;;  %p869_p2 = scmp.ne.s32.totalorder (!%p868_p7), %s862_s20, 0 }
  0x4a   : > { %159 = sbr.rel (%p868_p7) target bundleno = 117 (0x75), region = 28  ;;  %s423_s14 = sshll.u32 (!%p868_p7), %s788_s8, 5 }
  0x4b   : > { %s162_s17 = scalar_lea.sflag (!%p868_p7), [#allocation3], %s788_s8  ;;  %s792_s30 = scalar_lea.vmem (!%p868_p7), [#allocation2], %s423_s14 }
  0x4f   : > { %599 = dma.done.wait (%p869_p2), %s162_s17, 512  }
  0x50   : > { %601 = vsyncadd (%p869_p2), %s162_s17, 4294966784  ;;  %s424_s3 = sshll.u32 %s788_s8, 3  ;;  %s171_s7 = scalar_lea.sflag [#allocation6], %s788_s8 }
  0x51   : > { %s174_s16 = scalar_lea.vmem [#allocation5], %s424_s3 }
  0x52   : > { %603 = dma.done.wait (%p869_p2), %s171_s7, 128  }
  0x53   : > { %605 = vsyncadd (%p869_p2), %s171_s7, 4294967168  ;;  %v248_v0 = vlaneseq  ;;  %v203_v2 = vld [vmem:[%s174_s16] ss:$4 sm:$0x3]  ;;  %v631_v32 = vmov 1.0   ;;  %vm291_vm1 = vcmask 1040384  }
  0x54   : > { %v426_v5 = vld [vmem:[%s174_s16 + $0x1] ss:$4 sm:$0x3]  ;;  %v427_v6 = vld [vmem:[%s174_s16 + $0x2] ss:$4 sm:$0x3] }
  0x55   : > { %v249_v1 = vshrl.u32 %v248_v0, 7  ;;  %v428_v7 = vld [vmem:[%s174_s16 + $0x3] ss:$4 sm:$0x3]  ;;  %vm294_vm2 = vcmask 1041408   ;;  %vm297_vm3 = vcmask 1042432  }
  0x56   : > { %v211_v8 = vld [vmem:[%s792_s30] ss:$8 sm:$0x3]  ;;  %v429_v10 = vld [vmem:[%s792_s30 + $0x3] ss:$8 sm:$0x3] }
  0x57   : > { %v250_v3 = vsub.s32 0, %v249_v1  ;;  %v254_v4 = vsub.s32 1, %v249_v1  ;;  %v212_v9 = vmul.f32 %v211_v8, %v203_v2  ;;  %v430_v11 = vld [vmem:[%s792_s30 + $0x6] ss:$8 sm:$0x3]  ;;  %v215_v12 = vmul.f32 %v429_v10, %v426_v5  ;;  %s199_s20 = scalar_lea.vmem [#allocation7], %s424_s3 }
  0x58   : > { %v219_v13 = vmul.f32 %v430_v11, %v427_v6  ;;  %v431_v14 = vld [vmem:[%s792_s30 + $0x1] ss:$8 sm:$0x3]  ;;  %v432_v15 = vld [vmem:[%s792_s30 + $0x4] ss:$8 sm:$0x3] }
  0x59   : > { %v224_v16 = vmul.f32 %v431_v14, %v203_v2  ;;  %v227_v17 = vmul.f32 %v432_v15, %v426_v5  ;;  %v433_v18 = vld [vmem:[%s792_s30 + $0x7] ss:$8 sm:$0x3]  ;;  %v434_v19 = vld [vmem:[%s792_s30 + $0x2] ss:$8 sm:$0x3]  ;;  %v216_v20 = vadd.f32 %v215_v12, %v212_v9 }
  0x5a   : > { %v231_v21 = vmul.f32 %v433_v18, %v427_v6  ;;  %v236_v22 = vmul.f32 %v434_v19, %v203_v2  ;;  %v435_v23 = vld [vmem:[%s792_s30 + $0x5] ss:$8 sm:$0x3]  ;;  %v436_v24 = vld [vmem:[%s792_s30 + $0x10] ss:$8 sm:$0x3] }
  0x5b   : > { %vm210_vm0 = vcmp.lt.f32.partialorder %v428_v7, 0.0  ;;  %v228_v25 = vadd.f32 %v227_v17, %v224_v16  ;;  %v239_v26 = vmul.f32 %v435_v23, %v426_v5  ;;  %v243_v27 = vmul.f32 %v436_v24, %v427_v6  ;;  %s320_s19 = sshll.u32 %s199_s20, 4  ;;  %s444_s28 = sshll.u32 %s669_s13, 7  ;;  %s321_s19 = int_to_ptr.vmem [resolvable:$true] %s320_s19 }
  0x5c   : > { %v220_v28 = vadd.f32 %v219_v13, %v216_v20  ;;  %v246_v33 = vsel %vm210_vm0, 0.0, %v631_v32  ;;  %s318_s25 = scalar_lea.hbm %s858_s2, %s444_s28  ;;  %s306_s26 = scalar_lea.sflag [#allocation4], %s788_s8 }
  0x5d   : > { %v232_v29 = vadd.f32 %v231_v21, %v228_v25  ;;  %v240_v30 = vadd.f32 %v239_v26, %v236_v22  ;;  %v284_v41 = vrot.slane %v246_v33, %v250_v3  ;;  %v288_v42 = vrot.slane %v246_v33, %v254_v4  ;;  %s556_s27 = scalar_lea.vmem %s321_s19, 128  ;;  %p870_p13 = scmp.ne.s32.totalorder %s863_s21, 0 }
  0x5e   : > { %v221_v31 = vsel %vm210_vm0, 1.0, %v220_v28  ;;  %p557_p6 = scmp.ne.s32.totalorder %s321_s19, %s556_s27  ;;  %s632_s29 = smov [#allocation7]  }
  0x5f   : > { %v233_v34 = vsel %vm210_vm0, 1.0, %v232_v29  ;;  %v244_v35 = vadd.f32 %v243_v27, %v240_v30  ;;  %v251_v36 = vrot.slane %v221_v31, %v250_v3  ;;  %v255_v37 = vrot.slane %v221_v31, %v254_v4  ;;  %s560_s23 = sshll.u32 %s632_s29, 4  ;;  %s561_s23 = int_to_ptr.vmem [resolvable:$false] %s560_s23 }
  0x60   : > { %v262_v38 = vrot.slane %v233_v34, %v250_v3  ;;  %v266_v39 = vrot.slane %v233_v34, %v254_v4  ;;  %p558_p12 = pnand %p557_p6, %p870_p13  ;;  %s562_s13 = scalar_lea.vmem %s561_s23, 256 }
  0x61   : > { %v245_v40 = vsel %vm210_vm0, 1.0, %v244_v35  ;;  %p563_p10 = scmp.lt.s32.totalorder %s321_s19, %s561_s23  ;;  %p564_p1 = scmp.lt.s32.totalorder %s562_s13, %s556_s27 }
  0x62   : > { %v273_v43 = vrot.slane %v245_v40, %v250_v3  ;;  %v277_v44 = vrot.slane %v245_v40, %v254_v4  ;;  %v292_v45 = vsel %vm291_vm1, %v251_v36, %v262_v38  ;;  %v293_v46 = vsel %vm291_vm1, %v255_v37, %v266_v39  ;;  %p559_p8 = pneg %p558_p12 }
  0x63   : > { %p565_p3 = por %p564_p1, %p563_p10 }
  0x64   : > { %v295_v47 = vsel %vm294_vm2, %v292_v45, %v273_v43  ;;  %v296_v48 = vsel %vm294_vm2, %v293_v46, %v277_v44 }
  0x65   : > { %v298_v49 = vsel %vm297_vm3, %v295_v47, %v284_v41  ;;  %v299_v50 = vsel %vm297_vm3, %v296_v48, %v288_v42  ;;  %p566_p5 = pnand %p565_p3, %p559_p8 }
  0x66   : > { %v302_v51 = vcombine.low %v298_v49, %v299_v50 }
  0x68   : > { %304 = vst [vmem:[%s199_s20] sm:$0xff] %v302_v51 }
  0x69   : > { %569 = shalt.err (!%p566_p5)
}
  0x6a   : > { %s570_s5 = scalar_lea.hbm %s318_s25, 128  ;;  %s574_s14 = scalar_lea.hbm %s858_s2, 256 }
  0x6b   : > { %p571_p9 = scmp.ne.s32.totalorder %s318_s25, %s570_s5  ;;  %p575_p4 = scmp.lt.s32.totalorder %s318_s25, %s858_s2 }
  0x6c   : > { %p576_p7 = scmp.lt.s32.totalorder %s574_s14, %s570_s5 }
  0x6d   : > { %p572_p11 = pnand %p571_p9, %p870_p13 }
  0x6e   : > { %p577_p2 = por %p576_p7, %p575_p4 }
  0x6f   : > { %p573_p0 = pneg %p572_p11 }
  0x71   : > { %p578_p6 = pnand %p577_p2, %p573_p0 }
  0x73   : > { %581 = shalt.err (!%p578_p6)
}
  0x74   : > { %449 = dma.vmem_to_hbm [thread:$0]  (%p870_p13), %s321_s19, 128, %s318_s25, %s306_s26  }
  0x75 PF: > { %s332_s3 = sand.u32 1, %s612_s9   ;;  %p871_p12 = scmp.ne.s32.totalorder %s864_s22, 0 }
  0x76   : > { %p872_p8 = scmp.ge.s32.totalorder %s624_s12, 2  ;;  %s333_s7 = scalar_lea.sflag [#allocation4], %s332_s3 }
  0x78   : > { %p459_p10 = pnand %p872_p8, %p871_p12 }
  0x7a   : > { %p460_p1 = pneg %p459_p10 }
  0x7c   : > { %607 = dma.done.wait (%p460_p1), %s333_s7, 128  }
  0x7d   : > { %609 = vsyncadd (%p460_p1), %s333_s7, 4294967168  ;;  %p18_p3 = scmp.ge.s32.totalorder %s673_s15, 4   ;;  %s873_s9 = smov %s616_s10 }
  0x7e   : > { %s874_s10 = smov %s620_s11  ;;  %s875_s11 = smov %s685_s18 }
  0x7f   : > { %s876_s12 = smov %s673_s15  ;;  %20 = sbr.rel (!%p18_p3) target bundleno = 7 (0x7), region = 97 }
  0x84   :  { %338 = vsyncpa [#allocation3], 1 }
  0x85   :  { %340 = vsyncpa [#allocation3 + $0x1], 1 }
  0x86   :  { %341 = vsyncpa [#allocation6], 1 }
  0x87   :  { %343 = vsyncpa [#allocation6 + $0x1], 1 }
  0x88   :  { %344 = vsyncpa [#allocation4], 1 }
  0x89   :  { %346 = vsyncpa [#allocation4 + $0x1], 1 }

</bundles_post_ra>
